<compile_context>
chip_gen: v7x
topology: tpu7x:2x2x1
jax: 0.10.0
libtpu: 0.0.40
codegen_flags: <defaults>
</compile_context>

<pallas_src>
import functools

import jax
import jax.numpy as jnp
from jax.experimental import pallas as pl
from jax.experimental.pallas import tpu as pltpu

LANE = 128      # vreg lane width
SUBLANE = 8     # vreg sublane count


def _leaky_relu(v, slope=0.01):
    return jnp.where(v > 0, v, slope * v)


def _round_up(n, m):
    return ((n + m - 1) // m) * m


def _pad2(a, rows, cols):
    r, c = a.shape
    return jnp.pad(a, ((0, rows - r), (0, cols - c)))


def _tensorcores_per_chip():
    """How many TensorCores a 'parallel' grid axis is sharded across.

    v5e / v6e have 1 TC per chip (grid == serial loop, splitting is pure
    overhead); v7x (and megacore v4 / v5p) have 2."""
    try:
        kind = jax.devices()[0].device_kind.lower()
    except Exception:
        return 1
    if "v7" in kind or "v4" in kind or "v5p" in kind:
        return 2
    return 1


def mlp_kernel(x_ref,
               w1_ref, b1_ref,
               w2_ref, b2_ref,
               w3_ref, b3_ref,
               w4_ref, b4_ref,
               o_ref):
    """Fused MLP on one batch tile, fully resident in VMEM.

    All matmuls take bf16 operands (single MXU pass) and accumulate in f32;
    bias add + LeakyReLU run on the f32 accumulator; the activation is cast
    back to bf16 right before the next matmul. Hidden widths are zero-padded
    to 128 lanes (exact: LeakyReLU(0) = 0, zero rows/cols contribute 0)."""
    h = jnp.dot(x_ref[...], w1_ref[...],
                preferred_element_type=jnp.float32) + b1_ref[...]
    h = _leaky_relu(h).astype(jnp.bfloat16)

    h = jnp.dot(h, w2_ref[...],
                preferred_element_type=jnp.float32) + b2_ref[...]
    h = _leaky_relu(h).astype(jnp.bfloat16)

    h = jnp.dot(h, w3_ref[...],
                preferred_element_type=jnp.float32) + b3_ref[...]
    h = _leaky_relu(h).astype(jnp.bfloat16)

    out = jnp.dot(h, w4_ref[...],
                  preferred_element_type=jnp.float32) + b4_ref[...]
    o_ref[...] = out.astype(o_ref.dtype)


@functools.partial(jax.jit, static_argnames=("batch_tile",))
def nn_model_forward(x, params, batch_tile=8192):
    """x: [B, in_dim] float32. params: w1..w4 ([fi, fo]) and b1..b4 ([1, fo])."""
    B, in_dim = x.shape

    h1 = params["w1"].shape[1]          # 128
    h2 = params["w2"].shape[1]          # 64
    h3 = params["w3"].shape[1]          # 32
    n_classes = params["w4"].shape[1]

    # Lane-dense padded hidden widths (zero padding is numerically exact).
    h1p = _round_up(h1, LANE)
    h2p = _round_up(h2, LANE)
    h3p = _round_up(h3, LANE)

    bf16 = jnp.bfloat16
    x_bf = x.astype(bf16)                                   # halves the x stream
    w1p = _pad2(params["w1"], in_dim, h1p).astype(bf16)
    b1p = _pad2(params["b1"], 1, h1p)
    w2p = _pad2(params["w2"], h1p, h2p).astype(bf16)
    b2p = _pad2(params["b2"], 1, h2p)
    w3p = _pad2(params["w3"], h2p, h3p).astype(bf16)
    b3p = _pad2(params["b3"], 1, h3p)
    # fc4: pad only the contraction (rows); output columns stay unpadded so the
    # kernel writes exactly (B, n_classes) to HBM -> no post-kernel slice.
    w4p = _pad2(params["w4"], h3p, n_classes).astype(bf16)
    b4p = params["b4"]

    # --- batch tiling -------------------------------------------------------
    n_tc = _tensorcores_per_chip()
    tb = min(batch_tile, B)
    if n_tc >= 2 and B > 256:
        # Multi-TC chip: make the grid an even number of (near-)equal steps so
        # the "parallel" axis keeps both TensorCores busy (no idle tail core).
        n_pairs = pl.cdiv(B, n_tc * batch_tile)
        tb = min(tb, _round_up(pl.cdiv(B, n_tc * n_pairs), SUBLANE))
    # Single-TC chips (v5e / v6e): one maximal tile, no artificial split.
    grid = (pl.cdiv(B, tb),)

    # --- VMEM budget (computed, not a blanket cap) --------------------------
    ncp = _round_up(n_classes, LANE)
    weight_bytes = (in_dim * h1p + h1p * h2p + h2p * h3p + h3p * n_classes) * 2
    bias_bytes = SUBLANE * (h1p + h2p + h3p + ncp) * 4
    vmem_est = (
        2 * tb * _round_up(in_dim, LANE) * 2   # bf16 x tile, double-buffered
        + 2 * tb * ncp * 4                     # f32 out tile (lane-padded in VMEM)
        + 4 * tb * LANE * 4                    # in-kernel f32/bf16 intermediates
        + 2 * (weight_bytes + bias_bytes)      # resident params, double-buffered
    )
    try:
        vmem_cap = pltpu.get_tpu_info().vmem_capacity_bytes
    except Exception:
        vmem_cap = 64 * 1024 * 1024
    vmem_limit = int(min(vmem_cap, max(16 * 1024 * 1024, int(1.5 * vmem_est))))

    # Advisory cost estimate so XLA can overlap surrounding HLOs.
    flops = 2 * B * (in_dim * h1p + h1p * h2p + h2p * h3p + h3p * n_classes)
    bytes_accessed = (B * in_dim * 2 + B * n_classes * 4
                      + weight_bytes + (h1p + h2p + h3p + n_classes) * 4)
    cost = pl.CostEstimate(flops=flops, transcendentals=0,
                           bytes_accessed=bytes_accessed)

    def whole(arr):
        # Full-array block, identical for every batch tile (2-D params only).
        return pl.BlockSpec(arr.shape, lambda i: (0, 0))

    # Default double-buffering on both x and out: with the unpadded output the
    # per-step streams are small and balanced; no deeper pipelining needed.
    out = pl.pallas_call(
        mlp_kernel,
        out_shape=jax.ShapeDtypeStruct((B, n_classes), jnp.float32),
        grid_spec=pltpu.PrefetchScalarGridSpec(
            num_scalar_prefetch=0,
            grid=grid,
            in_specs=[
                pl.BlockSpec((tb, in_dim), lambda i: (i, 0)),
                whole(w1p), whole(b1p),
                whole(w2p), whole(b2p),
                whole(w3p), whole(b3p),
                whole(w4p), whole(b4p),
            ],
            out_specs=pl.BlockSpec((tb, n_classes), lambda i: (i, 0)),
        ),
        compiler_params=pltpu.CompilerParams(
            dimension_semantics=("parallel",),
            vmem_limit_bytes=vmem_limit,
        ),
        cost_estimate=cost,
    )(x_bf, w1p, b1p, w2p, b2p, w3p, b3p, w4p, b4p)

    return out


def init_params(key, in_dim, n_classes):
    """Deterministic init mimicking nn.Linear default (uniform +-1/sqrt(fan_in)).

    Weights are stored [in_features, out_features]; biases are [1, out_features]."""
    dims = [(in_dim, 128), (128, 64), (64, 32), (32, n_classes)]
    params = {}
    for idx, (fi, fo) in enumerate(dims, start=1):
        key, kw, kb = jax.random.split(key, 3)
        bound = 1.0 / (fi ** 0.5)
        params[f"w{idx}"] = jax.random.uniform(
            kw, (fi, fo), jnp.float32, minval=-bound, maxval=bound)
        params[f"b{idx}"] = jax.random.uniform(
            kb, (1, fo), jnp.float32, minval=-bound, maxval=bound)
    return params


def reference_forward_f32(x, params):
    """Pure-f32 reference (PyTorch-module semantics)."""
    h = x
    for idx in range(1, 4):
        h = h @ params[f"w{idx}"] + params[f"b{idx}"]
        h = jnp.where(h > 0, h, 0.01 * h)
    return h @ params["w4"] + params["b4"]


def reference_forward_bf16(x, params):
    """Reference matching the kernel's numerics (bf16 operands, f32 accumulate)."""
    h = x.astype(jnp.bfloat16)
    for idx in range(1, 4):
        acc = jnp.dot(h, params[f"w{idx}"].astype(jnp.bfloat16),
                      preferred_element_type=jnp.float32) + params[f"b{idx}"]
        acc = jnp.where(acc > 0, acc, 0.01 * acc)
        h = acc.astype(jnp.bfloat16)
    return jnp.dot(h, params["w4"].astype(jnp.bfloat16),
                   preferred_element_type=jnp.float32) + params["b4"]


if __name__ == "__main__":
    key = jax.random.PRNGKey(0)
    in_dim, n_classes = 32, 10

    kx, kp, kx2 = jax.random.split(key, 3)
    params = init_params(kp, in_dim, n_classes)

    # Small batch: single grid step.
    x = jax.random.normal(kx, (8, in_dim), jnp.float32)
    out = jax.block_until_ready(nn_model_forward(x, params))
    assert out.shape == (8, n_classes)
    assert jnp.allclose(out, reference_forward_bf16(x, params),
                        atol=1e-4, rtol=1e-4), "mismatch vs bf16 reference (B=8)"
    assert jnp.allclose(out, reference_forward_f32(x, params),
                        atol=5e-2, rtol=5e-2), "mismatch vs f32 reference (B=8)"

    # Larger batch: exercises multi-step grid / partial last tile on 2-TC chips.
    x2 = jax.random.normal(kx2, (300, in_dim), jnp.float32)
    out2 = jax.block_until_ready(nn_model_forward(x2, params))
    assert out2.shape == (300, n_classes)
    assert jnp.allclose(out2, reference_forward_bf16(x2, params),
                        atol=1e-4, rtol=1e-4), "mismatch vs bf16 reference (B=300)"
    assert jnp.allclose(out2, reference_forward_f32(x2, params),
                        atol=5e-2, rtol=5e-2), "mismatch vs f32 reference (B=300)"

    print("KERNEL_OK")
</pallas_src>

<mosaic_0001>
module attributes {stable_mosaic.version = 11 : i64} {
  func.func @mlp_kernel(%arg0: i32, %arg1: memref<8x32xbf16, #tpu.memory_space<vmem>>, %arg2: memref<32x128xbf16, #tpu.memory_space<vmem>>, %arg3: memref<1x128xf32, #tpu.memory_space<vmem>>, %arg4: memref<128x128xbf16, #tpu.memory_space<vmem>>, %arg5: memref<1x128xf32, #tpu.memory_space<vmem>>, %arg6: memref<128x128xbf16, #tpu.memory_space<vmem>>, %arg7: memref<1x128xf32, #tpu.memory_space<vmem>>, %arg8: memref<128x10xbf16, #tpu.memory_space<vmem>>, %arg9: memref<1x10xf32, #tpu.memory_space<vmem>>, %arg10: memref<8x10xf32, #tpu.memory_space<vmem>>) attributes {dimension_semantics = [#tpu.dimension_semantics<parallel>], iteration_bounds = array<i64: 1>, scalar_prefetch = 0 : i64, scratch_operands = 0 : i64, tpu.core_type = #tpu.core_type<tc>, window_params = [{transform_indices = @transform_0, window_bounds = array<i64: 8, 32>}, {pipeline_mode = #tpu.pipeline_mode<synchronous>, transform_indices = @transform_1, window_bounds = array<i64: 32, 128>}, {pipeline_mode = #tpu.pipeline_mode<synchronous>, transform_indices = @transform_2, window_bounds = array<i64: 1, 128>}, {pipeline_mode = #tpu.pipeline_mode<synchronous>, transform_indices = @transform_3, window_bounds = array<i64: 128, 128>}, {pipeline_mode = #tpu.pipeline_mode<synchronous>, transform_indices = @transform_4, window_bounds = array<i64: 1, 128>}, {pipeline_mode = #tpu.pipeline_mode<synchronous>, transform_indices = @transform_5, window_bounds = array<i64: 128, 128>}, {pipeline_mode = #tpu.pipeline_mode<synchronous>, transform_indices = @transform_6, window_bounds = array<i64: 1, 128>}, {pipeline_mode = #tpu.pipeline_mode<synchronous>, transform_indices = @transform_7, window_bounds = array<i64: 128, 10>}, {pipeline_mode = #tpu.pipeline_mode<synchronous>, transform_indices = @transform_8, window_bounds = array<i64: 1, 10>}, {transform_indices = @transform_9, window_bounds = array<i64: 8, 10>}]} {
    %c0 = arith.constant 0 : index
    %c0_0 = arith.constant 0 : index
    %0 = vector.load %arg1[%c0, %c0_0] : memref<8x32xbf16, #tpu.memory_space<vmem>>, vector<8x32xbf16>
    %c0_1 = arith.constant 0 : index
    %c0_2 = arith.constant 0 : index
    %1 = vector.load %arg2[%c0_1, %c0_2] : memref<32x128xbf16, #tpu.memory_space<vmem>>, vector<32x128xbf16>
    %cst = arith.constant dense<0.000000e+00> : vector<8x128xf32>
    %2 = tpu.matmul %0, %1, %cst {dimension_numbers = #tpu.dot_dimension_numbers<[1], [0], [0], [1], [0, 0, 1, 1], [], []>} : vector<8x32xbf16>, vector<32x128xbf16>, vector<8x128xf32> -> vector<8x128xf32>
    %c0_3 = arith.constant 0 : index
    %c0_4 = arith.constant 0 : index
    %3 = vector.load %arg3[%c0_3, %c0_4] : memref<1x128xf32, #tpu.memory_space<vmem>>, vector<1x128xf32>
    %4 = vector.broadcast %3 : vector<1x128xf32> to vector<8x128xf32>
    %5 = arith.addf %2, %4 : vector<8x128xf32>
    %cst_5 = arith.constant 0.000000e+00 : f32
    %6 = vector.broadcast %cst_5 : f32 to vector<8x128xf32>
    %7 = arith.cmpf ogt, %5, %6 : vector<8x128xf32>
    %cst_6 = arith.constant 0.00999999977 : f32
    %8 = vector.broadcast %cst_6 : f32 to vector<8x128xf32>
    %9 = arith.mulf %8, %5 : vector<8x128xf32>
    %10 = arith.select %7, %5, %9 : vector<8x128xi1>, vector<8x128xf32>
    %11 = arith.truncf %10 : vector<8x128xf32> to vector<8x128xbf16>
    %c0_7 = arith.constant 0 : index
    %c0_8 = arith.constant 0 : index
    %12 = vector.load %arg4[%c0_7, %c0_8] : memref<128x128xbf16, #tpu.memory_space<vmem>>, vector<128x128xbf16>
    %cst_9 = arith.constant dense<0.000000e+00> : vector<8x128xf32>
    %13 = tpu.matmul %11, %12, %cst_9 {dimension_numbers = #tpu.dot_dimension_numbers<[1], [0], [0], [1], [0, 0, 1, 1], [], []>} : vector<8x128xbf16>, vector<128x128xbf16>, vector<8x128xf32> -> vector<8x128xf32>
    %c0_10 = arith.constant 0 : index
    %c0_11 = arith.constant 0 : index
    %14 = vector.load %arg5[%c0_10, %c0_11] : memref<1x128xf32, #tpu.memory_space<vmem>>, vector<1x128xf32>
    %15 = vector.broadcast %14 : vector<1x128xf32> to vector<8x128xf32>
    %16 = arith.addf %13, %15 : vector<8x128xf32>
    %cst_12 = arith.constant 0.000000e+00 : f32
    %17 = vector.broadcast %cst_12 : f32 to vector<8x128xf32>
    %18 = arith.cmpf ogt, %16, %17 : vector<8x128xf32>
    %cst_13 = arith.constant 0.00999999977 : f32
    %19 = vector.broadcast %cst_13 : f32 to vector<8x128xf32>
    %20 = arith.mulf %19, %16 : vector<8x128xf32>
    %21 = arith.select %18, %16, %20 : vector<8x128xi1>, vector<8x128xf32>
    %22 = arith.truncf %21 : vector<8x128xf32> to vector<8x128xbf16>
    %c0_14 = arith.constant 0 : index
    %c0_15 = arith.constant 0 : index
    %23 = vector.load %arg6[%c0_14, %c0_15] : memref<128x128xbf16, #tpu.memory_space<vmem>>, vector<128x128xbf16>
    %cst_16 = arith.constant dense<0.000000e+00> : vector<8x128xf32>
    %24 = tpu.matmul %22, %23, %cst_16 {dimension_numbers = #tpu.dot_dimension_numbers<[1], [0], [0], [1], [0, 0, 1, 1], [], []>} : vector<8x128xbf16>, vector<128x128xbf16>, vector<8x128xf32> -> vector<8x128xf32>
    %c0_17 = arith.constant 0 : index
    %c0_18 = arith.constant 0 : index
    %25 = vector.load %arg7[%c0_17, %c0_18] : memref<1x128xf32, #tpu.memory_space<vmem>>, vector<1x128xf32>
    %26 = vector.broadcast %25 : vector<1x128xf32> to vector<8x128xf32>
    %27 = arith.addf %24, %26 : vector<8x128xf32>
    %cst_19 = arith.constant 0.000000e+00 : f32
    %28 = vector.broadcast %cst_19 : f32 to vector<8x128xf32>
    %29 = arith.cmpf ogt, %27, %28 : vector<8x128xf32>
    %cst_20 = arith.constant 0.00999999977 : f32
    %30 = vector.broadcast %cst_20 : f32 to vector<8x128xf32>
    %31 = arith.mulf %30, %27 : vector<8x128xf32>
    %32 = arith.select %29, %27, %31 : vector<8x128xi1>, vector<8x128xf32>
    %33 = arith.truncf %32 : vector<8x128xf32> to vector<8x128xbf16>
    %c0_21 = arith.constant 0 : index
    %c0_22 = arith.constant 0 : index
    %34 = vector.load %arg8[%c0_21, %c0_22] : memref<128x10xbf16, #tpu.memory_space<vmem>>, vector<128x10xbf16>
    %cst_23 = arith.constant dense<0.000000e+00> : vector<8x10xf32>
    %35 = tpu.matmul %33, %34, %cst_23 {dimension_numbers = #tpu.dot_dimension_numbers<[1], [0], [0], [1], [0, 0, 1, 1], [], []>} : vector<8x128xbf16>, vector<128x10xbf16>, vector<8x10xf32> -> vector<8x10xf32>
    %c0_24 = arith.constant 0 : index
    %c0_25 = arith.constant 0 : index
    %36 = vector.load %arg9[%c0_24, %c0_25] : memref<1x10xf32, #tpu.memory_space<vmem>>, vector<1x10xf32>
    %37 = vector.broadcast %36 : vector<1x10xf32> to vector<8x10xf32>
    %38 = arith.addf %35, %37 : vector<8x10xf32>
    %c0_26 = arith.constant 0 : index
    %c0_27 = arith.constant 0 : index
    %39 = vector.load %arg10[%c0_26, %c0_27] : memref<8x10xf32, #tpu.memory_space<vmem>>, vector<8x10xf32>
    tpu.vector_store %arg10[%c0_26, %c0_27], %38 {strides = array<i32>} : memref<8x10xf32, #tpu.memory_space<vmem>>, vector<8x10xf32>,
    return
  }
  func.func @transform_0(%arg0: i32) -> (i32, i32) {
    %c0_i32 = arith.constant 0 : i32
    %c0_i32_0 = arith.constant 0 : i32
    return %arg0, %c0_i32 : i32, i32
  }
  func.func @transform_1(%arg0: i32) -> (i32, i32) {
    %c0_i32 = arith.constant 0 : i32
    %c0_i32_0 = arith.constant 0 : i32
    %c0_i32_1 = arith.constant 0 : i32
    return %c0_i32, %c0_i32_0 : i32, i32
  }
  func.func @transform_2(%arg0: i32) -> (i32, i32) {
    %c0_i32 = arith.constant 0 : i32
    %c0_i32_0 = arith.constant 0 : i32
    %c0_i32_1 = arith.constant 0 : i32
    return %c0_i32, %c0_i32_0 : i32, i32
  }
  func.func @transform_3(%arg0: i32) -> (i32, i32) {
    %c0_i32 = arith.constant 0 : i32
    %c0_i32_0 = arith.constant 0 : i32
    %c0_i32_1 = arith.constant 0 : i32
    return %c0_i32, %c0_i32_0 : i32, i32
  }
  func.func @transform_4(%arg0: i32) -> (i32, i32) {
    %c0_i32 = arith.constant 0 : i32
    %c0_i32_0 = arith.constant 0 : i32
    %c0_i32_1 = arith.constant 0 : i32
    return %c0_i32, %c0_i32_0 : i32, i32
  }
  func.func @transform_5(%arg0: i32) -> (i32, i32) {
    %c0_i32 = arith.constant 0 : i32
    %c0_i32_0 = arith.constant 0 : i32
    %c0_i32_1 = arith.constant 0 : i32
    return %c0_i32, %c0_i32_0 : i32, i32
  }
  func.func @transform_6(%arg0: i32) -> (i32, i32) {
    %c0_i32 = arith.constant 0 : i32
    %c0_i32_0 = arith.constant 0 : i32
    %c0_i32_1 = arith.constant 0 : i32
    return %c0_i32, %c0_i32_0 : i32, i32
  }
  func.func @transform_7(%arg0: i32) -> (i32, i32) {
    %c0_i32 = arith.constant 0 : i32
    %c0_i32_0 = arith.constant 0 : i32
    %c0_i32_1 = arith.constant 0 : i32
    return %c0_i32, %c0_i32_0 : i32, i32
  }
  func.func @transform_8(%arg0: i32) -> (i32, i32) {
    %c0_i32 = arith.constant 0 : i32
    %c0_i32_0 = arith.constant 0 : i32
    %c0_i32_1 = arith.constant 0 : i32
    return %c0_i32, %c0_i32_0 : i32, i32
  }
  func.func @transform_9(%arg0: i32) -> (i32, i32) {
    %c0_i32 = arith.constant 0 : i32
    %c0_i32_0 = arith.constant 0 : i32
    return %arg0, %c0_i32 : i32, i32
  }
}

</mosaic_0001>

<bundles_post_ra>
// kernel: nn_model_forward.1
= control target key start
LH: loop header
LB: loop body
LE: loop exit
PB: predicated region body
PF: predicated region fallthrough
CT: control target
= control target key end

     0   :  { %v645_v1 = vmov 0.0   ;;  %vm646_vm0 = vmmov 0   ;;  %vm58_vm1 = vcmask 261120   ;;  %s837_s0 = inlined_call_operand.vmem [shape: bf16[8,32], index: 0, kind: input, shape index: {}]   ;;  %s838_s1 = inlined_call_operand.vmem [shape: bf16[32,128], index: 1, kind: input, shape index: {}]   ;;  %s839_s2 = inlined_call_operand.vmem [shape: f32[1,128], index: 2, kind: input, shape index: {}]   ;;  %s840_s3 = inlined_call_operand.vmem [shape: bf16[128,128], index: 3, kind: input, shape index: {}]   ;;  %s841_s4 = inlined_call_operand.vmem [shape: f32[1,128], index: 4, kind: input, shape index: {}]   ;;  %s842_s5 = inlined_call_operand.vmem [shape: bf16[128,128], index: 5, kind: input, shape index: {}]   ;;  %s843_s6 = inlined_call_operand.vmem [shape: f32[1,128], index: 6, kind: input, shape index: {}]   ;;  %s844_s7 = inlined_call_operand.vmem [shape: bf16[128,10], index: 7, kind: input, shape index: {}]   ;;  %s845_s8 = inlined_call_operand.vmem [shape: f32[1,10], index: 8, kind: input, shape index: {}]   ;;  %s846_s9 = inlined_call_operand.hbm [shape: f32[8,10], index: 9, kind: output, shape index: {}]  }
   0x1   :  { %v595_v0 = vld [vmem:[%s838_s1] sm:$0xff]   ;;  %524 = vmatprep.subr.bf16.mxu0 %v645_v1  ;;  %532 = vmatprep.subr.bf16.mxu1 %v645_v1  ;;  %v596_v2 = vld [vmem:[%s838_s1 + $0x8] sm:$0xff]   ;;  %v599_v6 = vld [vmem:[%s840_s3 + $0x10] sm:$0xff]  }
   0x2   :  { %525 = vmatpush3.bf16.msra.mxu0 %v595_v0  ;;  %528 = vmatprep.mubr.msk.bf16.mxu0 %vm646_vm0, %v645_v1  ;;  %v597_v3 = vld [vmem:[%s840_s3] sm:$0xff]   ;;  %v598_v4 = vld [vmem:[%s840_s3 + $0x8] sm:$0xff]   ;;  %v600_v7 = vld [vmem:[%s840_s3 + $0x18] sm:$0xff]  }
   0x3   :  { %526 = vmatprep.subr.bf16.mxu0 %v645_v1  ;;  %548 = vmatprep.mubr.msk.bf16.mxu1 %vm646_vm0, %v645_v1  ;;  %v34_v5 = vld [vmem:[%s837_s0] sm:$0xf]  ;;  %v602_v9 = vld [vmem:[%s840_s3 + $0x28] sm:$0xff]  }
   0x4   :  { %533 = vmatpush3.bf16.msra.mxu1 %v597_v3  ;;  %v601_v8 = vld [vmem:[%s840_s3 + $0x20] sm:$0xff]  }
   0x5   :  { %534 = vmatprep.subr.bf16.mxu1 %v645_v1 }
   0x6   :  { %527 = vmatpush3.bf16.msra.mxu0 %v596_v2 }
   0x7   :  { %552 = vmatprep.subr.bf16.mxu0 %v645_v1 }
   0x8   :  { %535 = vmatpush3.bf16.msra.mxu1 %v598_v4 }
   0x9   :  { %529 = vmatmul.mubr.msk.bf16.vlgmr.msra.gmra.mrb[0].mxu0 %vm58_vm1, %v34_v5  ;;  %536 = vmatprep.subr.bf16.mxu1 %v645_v1 }
   0xa   :  { %568 = vmatprep.mubr.msk.bf16.mxu0 %vm646_vm0, %v645_v1 }
   0xc   :  { %537 = vmatpush3.bf16.msra.mxu1 %v599_v6 }
   0xd   :  { %538 = vmatprep.subr.bf16.mxu1 %v645_v1 }
  0x10   :  { %539 = vmatpush3.bf16.msra.mxu1 %v600_v7 }
  0x11   :  { %540 = vmatprep.subr.bf16.mxu1 %v645_v1 }
  0x14   :  { %541 = vmatpush3.bf16.msra.mxu1 %v601_v8 }
  0x15   :  { %14 = vsyncpa [#allocation3], 0  ;;  %542 = vmatprep.subr.bf16.mxu1 %v645_v1  ;;  %v603_v10 = vld [vmem:[%s840_s3 + $0x30] sm:$0xff]   ;;  %v604_v11 = vld [vmem:[%s840_s3 + $0x38] sm:$0xff]   ;;  %vm447_vm5 = vcmask 80896  }
  0x16   :  { %v605_v12 = vld [vmem:[%s842_s5] sm:$0xff]   ;;  %v606_v13 = vld [vmem:[%s842_s5 + $0x8] sm:$0xff]   ;;  %v607_v14 = vld [vmem:[%s842_s5 + $0x10] sm:$0xff]  }
  0x17   :  { %553 = vmatpush3.bf16.msra.mxu0 %v605_v12  ;;  %v608_v15 = vld [vmem:[%s842_s5 + $0x18] sm:$0xff]   ;;  %v609_v16 = vld [vmem:[%s842_s5 + $0x20] sm:$0xff]   ;;  %v610_v17 = vld [vmem:[%s842_s5 + $0x28] sm:$0xff]  }
  0x18   :  { %543 = vmatpush3.bf16.msra.mxu1 %v602_v9  ;;  %554 = vmatprep.subr.bf16.mxu0 %v645_v1  ;;  %v463_v18 = vld [vmem:[%s839_s2] ss:$0 sm:$0xff]  ;;  %v611_v27 = vld [vmem:[%s842_s5 + $0x30] sm:$0xff]   ;;  %v612_v28 = vld [vmem:[%s842_s5 + $0x38] sm:$0xff]  }
  0x19   :  { %544 = vmatprep.subr.bf16.mxu1 %v645_v1  ;;  %v613_v29 = vld [vmem:[%s844_s7] sm:$0xff]   ;;  %v614_v30 = vld [vmem:[%s844_s7 + $0x8] sm:$0xff]   ;;  %v615_v31 = vld [vmem:[%s844_s7 + $0x10] sm:$0xff]  }
  0x1a   :  { %v616_v32 = vld [vmem:[%s844_s7 + $0x18] sm:$0xff]   ;;  %v617_v33 = vld [vmem:[%s844_s7 + $0x20] sm:$0xff]   ;;  %v618_v34 = vld [vmem:[%s844_s7 + $0x28] sm:$0xff]  }
  0x1b   :  { %555 = vmatpush3.bf16.msra.mxu0 %v606_v13  ;;  %v467_v35 = vld [vmem:[%s841_s4] ss:$0 sm:$0xff]  ;;  %v619_v44 = vld [vmem:[%s844_s7 + $0x30] sm:$0xff]   ;;  %v620_v45 = vld [vmem:[%s844_s7 + $0x38] sm:$0xff]   ;;  %s647_s7 = smov [#allocation2]  }
  0x1c   :  { %545 = vmatpush3.bf16.msra.mxu1 %v603_v10  ;;  %556 = vmatprep.subr.bf16.mxu0 %v645_v1  ;;  %v476_v46 = vld [vmem:[%s843_s6] ss:$0 sm:$0xff]  ;;  %s455_s19 = sshll.u32 %s647_s7, 4  ;;  %s456_s19 = int_to_ptr.vmem [resolvable:$true] %s455_s19 }
  0x1d   :  { %546 = vmatprep.subr.bf16.mxu1 %v645_v1  ;;  %v485_v55 = vld [vmem:[%s845_s8] ss:$0 sm:$0xff]  ;;  %s621_s6 = scalar_lea.vmem %s456_s19, 128  ;;  %p626_p1 = scmp.lt.s32.totalorder %s456_s19, %s456_s19 }
  0x1e   :  { %p622_p0 = scmp.ne.s32.totalorder %s456_s19, %s621_s6  ;;  %p627_p2 = scmp.lt.s32.totalorder %s621_s6, %s621_s6 }
  0x1f   :  { %557 = vmatpush3.bf16.msra.mxu0 %v607_v14 }
  0x20   :  { %547 = vmatpush3.bf16.msra.mxu1 %v604_v11  ;;  %558 = vmatprep.subr.bf16.mxu0 %v645_v1  ;;  %p628_p3 = por %p627_p2, %p626_p1 }
  0x21   :  { %572 = vmatprep.subr.bf16.mxu1 %v645_v1 }
  0x22   :  { %p629_p4 = pnand %p628_p3, %p622_p0 }
  0x23   :  { %559 = vmatpush3.bf16.msra.mxu0 %v608_v15 }
  0x24   :  { %560 = vmatprep.subr.bf16.mxu0 %v645_v1 }
  0x27   :  { %561 = vmatpush3.bf16.msra.mxu0 %v609_v16 }
  0x28   :  { %562 = vmatprep.subr.bf16.mxu0 %v645_v1 }
  0x2b   :  { %563 = vmatpush3.bf16.msra.mxu0 %v610_v17 }
  0x2c   :  { %564 = vmatprep.subr.bf16.mxu0 %v645_v1 }
  0x2f   :  { %565 = vmatpush3.bf16.msra.mxu0 %v611_v27 }
  0x30   :  { %566 = vmatprep.subr.bf16.mxu0 %v645_v1 }
  0x33   :  { %567 = vmatpush3.bf16.msra.mxu0 %v612_v28 }
  0xdc   :  { %v96_v19 = vpop.f32.mrb[0].mxu0 }
  0xdd   :  { %v97_v20 = vadd.f32 %v463_v18, %v96_v19  ;;  %v530_v21 = vpop.f32.mrb[1].mxu0 }
  0xde   :  { %v99_v22 = vpop.f32.mrb[2].mxu0 }
  0xdf   :  { %vm102_vm2 = vcmp.gt.f32.partialorder %v97_v20, 0.0  ;;  %v103_v23 = vmul.f32 0.01, %v97_v20  ;;  %v531_v24 = vpop.f32.mrb[3].mxu0 }
  0xe1   :  { %v104_v25 = vsel %vm102_vm2, %v97_v20, %v103_v23 }
  0xe2   :  { %v105_v26 = vpack.c.bf16 %v104_v25, %v104_v25 }
  0xe4   :  { %549 = vmatmul.mubr.bf16.vlgmr.msra.gmra.mrb[0].mxu1 %v105_v26 }
  0xe5   :  { %588 = vmatprep.mubr.msk.bf16.mxu1 %vm646_vm0, %v645_v1  ;;  %573 = vmatpush3.bf16.msra.mxu1 %v613_v29 }
  0xe6   :  { %574 = vmatprep.subr.bf16.mxu1 %v645_v1 }
  0xe9   :  { %575 = vmatpush3.bf16.msra.mxu1 %v614_v30 }
  0xea   :  { %576 = vmatprep.subr.bf16.mxu1 %v645_v1 }
  0xed   :  { %577 = vmatpush3.bf16.msra.mxu1 %v615_v31 }
  0xee   :  { %578 = vmatprep.subr.bf16.mxu1 %v645_v1 }
  0xf1   :  { %579 = vmatpush3.bf16.msra.mxu1 %v616_v32 }
  0xf2   :  { %580 = vmatprep.subr.bf16.mxu1 %v645_v1 }
  0xf5   :  { %581 = vmatpush3.bf16.msra.mxu1 %v617_v33 }
  0xf6   :  { %582 = vmatprep.subr.bf16.mxu1 %v645_v1 }
  0xf9   :  { %583 = vmatpush3.bf16.msra.mxu1 %v618_v34 }
  0xfa   :  { %584 = vmatprep.subr.bf16.mxu1 %v645_v1 }
  0xfd   :  { %585 = vmatpush3.bf16.msra.mxu1 %v619_v44 }
  0xfe   :  { %586 = vmatprep.subr.bf16.mxu1 %v645_v1 }
 0x101   :  { %587 = vmatpush3.bf16.msra.mxu1 %v620_v45 }
 0x1b7   :  { %v211_v36 = vpop.f32.mrb[0].mxu1 }
 0x1b8   :  { %v212_v37 = vadd.f32 %v467_v35, %v211_v36  ;;  %v550_v38 = vpop.f32.mrb[1].mxu1 }
 0x1b9   :  { %v214_v39 = vpop.f32.mrb[2].mxu1 }
 0x1ba   :  { %vm217_vm3 = vcmp.gt.f32.partialorder %v212_v37, 0.0  ;;  %v218_v40 = vmul.f32 0.01, %v212_v37  ;;  %v551_v41 = vpop.f32.mrb[3].mxu1 }
 0x1bc   :  { %v219_v42 = vsel %vm217_vm3, %v212_v37, %v218_v40 }
 0x1bd   :  { %v220_v43 = vpack.c.bf16 %v219_v42, %v219_v42 }
 0x1bf   :  { %569 = vmatmul.mubr.bf16.vlgmr.msra.gmra.mrb[4].mxu0 %v220_v43 }
 0x292   :  { %v326_v47 = vpop.f32.mrb[4].mxu0 }
 0x293   :  { %v327_v48 = vadd.f32 %v476_v46, %v326_v47  ;;  %v570_v49 = vpop.f32.mrb[5].mxu0 }
 0x294   :  { %v329_v50 = vpop.f32.mrb[6].mxu0 }
 0x295   :  { %vm332_vm4 = vcmp.gt.f32.partialorder %v327_v48, 0.0  ;;  %v333_v51 = vmul.f32 0.01, %v327_v48  ;;  %v571_v52 = vpop.f32.mrb[7].mxu0 }
 0x297   :  { %v334_v53 = vsel %vm332_vm4, %v327_v48, %v333_v51 }
 0x298   :  { %v335_v54 = vpack.c.bf16 %v334_v53, %v334_v53 }
 0x29a   :  { %589 = vmatmul.mubr.bf16.vlgmr.msra.gmra.mrb[4].mxu1 %v335_v54 }
 0x36d   :  { %v441_v56 = vpop.f32.mrb[4].mxu1 }
 0x36e   :  { %v442_v57 = vadd.f32 %v485_v55, %v441_v56  ;;  %v590_v58 = vpop.f32.mrb[5].mxu1 }
 0x36f   :  { %v444_v59 = vpop.f32.mrb[6].mxu1 }
 0x370   :  { %v591_v60 = vpop.f32.mrb[7].mxu1  ;;  %448 = vst.msk [vmem:[#allocation2] sm:$0xff] %vm447_vm5, %v442_v57 }
 0x371   :  { %632 = shalt.err (!%p629_p4)
}
 0x372   :  { %s633_s8 = scalar_lea.hbm %s846_s9, 128 }
 0x373   :  { %p634_p5 = scmp.ne.s32.totalorder %s846_s9, %s633_s8  ;;  %p637_p6 = scmp.lt.u32.totalorder %s633_s8, %s846_s9 }
 0x375   :  { %p639_p7 = pnand %p637_p6, %p634_p5 }
 0x377   :  { %642 = shalt.err (!%p639_p7)
}
 0x378   :  { %458 = dma.vmem_to_hbm [thread:$0]  %s456_s19, 128, %s846_s9, [#allocation3]  }
 0x379   :  { %643 = dma.done.wait [#allocation3], 128  }
 0x37a   :  { %644 = vsyncadd [#allocation3], 4294967168 }
 0x37b   :  { %462 = vsyncpa [#allocation3], 1 }

</bundles_post_ra>
